<compile_context>
chip_gen: v7x
topology: tpu7x:2x2x1
jax: 0.10.0
libtpu: 0.0.40
codegen_flags: <defaults>
</compile_context>

<pallas_src>
import jax
import jax.numpy as jnp
import numpy as np
from jax import lax
from jax.experimental import pallas as pl
from jax.experimental.pallas import tpu as pltpu


def residual_stack_kernel(x_ref, b3_ref, b1_ref, gamma_ref, o_ref):
    # x_ref:     (Nb, H, W*C)  f32   Nb images, lane-merged NHWC (lane = w*C + c)
    # b3_ref:    (L, 3*W*C, W*Cr) bf16  block-Toeplitz 3x3 conv weights (dy-major)
    # b1_ref:    (L, W*Cr, W*C)   bf16  block-diagonal 1x1 conv weights
    # gamma_ref: (1, W*C)       f32   per-channel scale tiled across W
    # o_ref:     (Nb, H, W*C)   f32
    Nb, H, WC = x_ref.shape
    L = b3_ref.shape[0]

    zero_row = jnp.zeros((Nb, 1, WC), jnp.float32)

    def layer(l, x):
        a = jnp.maximum(x, 0.0)                                   # (Nb, H, WC) f32
        # dy-shifted slabs, built entirely in registers (zero halo per image).
        up = jnp.concatenate([zero_row, lax.slice_in_dim(a, 0, H - 1, axis=1)],
                             axis=1)                              # rows y-1
        dn = jnp.concatenate([lax.slice_in_dim(a, 1, H, axis=1), zero_row],
                             axis=1)                              # rows y+1
        # 3x3 conv as ONE matmul: concat the 3 slabs along the (128-aligned) lane
        # axis -> K = 3*W*C, fold the Nb image dim into M (free: H % 8 == 0).
        lhs = jnp.concatenate([up, a, dn], axis=2).reshape(Nb * H, 3 * WC)
        conv3 = jnp.dot(lhs.astype(jnp.bfloat16), b3_ref[l],
                        preferred_element_type=jnp.float32)       # (Nb*H, W*Cr)
        # ReLU, 1x1 conv (block-diagonal), residual add (f32).
        h = jnp.maximum(conv3, 0.0).astype(jnp.bfloat16)
        delta = jnp.dot(h, b1_ref[l],
                        preferred_element_type=jnp.float32)       # (Nb*H, W*C)
        return x + delta.reshape(Nb, H, WC)

    x = lax.fori_loop(0, L, layer, x_ref[...].astype(jnp.float32), unroll=True)

    # Epilogue: ReLU(gamma * x), lane-dense (WC multiple of 128) full-width store.
    g = gamma_ref[...].reshape(1, 1, WC)
    o_ref[...] = jnp.maximum(x * g, 0.0).astype(o_ref.dtype)


def _choose_block_batch(N, H, target_rows=256):
    """Images folded per grid step: fill the MXU (~256 rows on v6e/v7x) but keep
    >= 2 grid steps so v7x's two TensorCores both get work."""
    nb = min(max(1, target_rows // H), max(1, N // 2))
    while N % nb:
        nb -= 1
    return max(nb, 1)


@jax.jit
def residual_stack_forward(x_nchw, b3, b1, gamma):
    """x_nchw: (N, C, H, W) f32; b3: (L, 3*W*C, W*Cr) bf16; b1: (L, W*Cr, W*C) bf16;
    gamma: (C,) f32.  Returns (N, C, H, W) f32."""
    N, C, H, W = x_nchw.shape
    L = b3.shape[0]
    Cr = C // 4
    WC, WCr = W * C, W * Cr

    assert WC % 128 == 0, "lane-dense layout requires W*C to be a multiple of 128"
    assert H % 8 == 0, "H must be a multiple of 8 (sublane alignment)"
    assert b3.shape == (L, 3 * WC, WCr) and b1.shape == (L, WCr, WC)

    Nb = _choose_block_batch(N, H)

    # Conservative double-buffered VMEM footprint guard (weights + in/out blocks).
    vmem_bytes = (2 * (b3.size * b3.dtype.itemsize + b1.size * b1.dtype.itemsize)
                  + 2 * 2 * Nb * H * WC * 4 + WC * 4)
    assert vmem_bytes < 12 * 1024 * 1024, (
        f"VMEM footprint {vmem_bytes/2**20:.1f} MiB too large; "
        "switch to im2col / W-tiled weights (see TODO at top of file)")

    # NCHW -> NHWC -> merge (W, C) onto the lane axis (free view; NHWC contiguous).
    x_m = jnp.transpose(x_nchw, (0, 2, 3, 1)).reshape(N, H, WC)
    gamma_m = jnp.tile(gamma.reshape(1, C), (1, W)).reshape(1, WC).astype(jnp.float32)

    out_m = pl.pallas_call(
        residual_stack_kernel,
        out_shape=jax.ShapeDtypeStruct((N, H, WC), x_m.dtype),
        grid_spec=pltpu.PrefetchScalarGridSpec(
            num_scalar_prefetch=0,
            grid=(N // Nb,),
            in_specs=[
                pl.BlockSpec((Nb, H, WC), lambda b: (b, 0, 0)),
                pl.BlockSpec((L, 3 * WC, WCr), lambda b: (0, 0, 0)),
                pl.BlockSpec((L, WCr, WC), lambda b: (0, 0, 0)),
                pl.BlockSpec((1, WC), lambda b: (0, 0)),
            ],
            out_specs=pl.BlockSpec((Nb, H, WC), lambda b: (b, 0, 0)),
        ),
        compiler_params=pltpu.CompilerParams(
            dimension_semantics=("parallel",)),   # independent blocks -> v7x megacore
    )(x_m, b3, b1, gamma_m)

    return jnp.transpose(out_m.reshape(N, H, W, C), (0, 3, 1, 2))


def pack_weights(w3_oihw, w1_oihw, W):
    """Host-side (one-time) repack of PyTorch-layout conv weights for the kernel.

    w3_oihw: (L, Cr, C, 3, 3) -> b3: (L, 3*W*C, W*Cr) bf16  block-Toeplitz, dy-major
    w1_oihw: (L, C, Cr, 1, 1) -> b1: (L, W*Cr, W*C)   bf16  block-diagonal
    The W-boundary (left/right zero padding) is encoded by zero blocks, so the
    kernel needs no rolls / wrap masks.
    """
    w3 = np.asarray(w3_oihw, np.float32)
    w1 = np.asarray(w1_oihw, np.float32)
    L, Cr, C = w3.shape[:3]

    b3 = np.zeros((L, 3, W * C, W * Cr), np.float32)
    for dy in range(3):
        for dx in range(3):
            blk = np.transpose(w3[:, :, :, dy, dx], (0, 2, 1))   # (L, C, Cr)
            for wo in range(W):
                wi = wo + dx - 1
                if 0 <= wi < W:                                   # W-boundary: zeros
                    b3[:, dy, wi * C:(wi + 1) * C, wo * Cr:(wo + 1) * Cr] = blk
    b3 = b3.reshape(L, 3 * W * C, W * Cr)

    b1 = np.zeros((L, W * Cr, W * C), np.float32)
    blk1 = np.transpose(w1[:, :, :, 0, 0], (0, 2, 1))             # (L, Cr, C)
    for wo in range(W):
        b1[:, wo * Cr:(wo + 1) * Cr, wo * C:(wo + 1) * C] = blk1

    return jnp.asarray(b3, jnp.bfloat16), jnp.asarray(b1, jnp.bfloat16)


def ref_forward(x, w3_oihw, w1_oihw, gamma):
    """Pure-JAX reference mirroring the PyTorch module (NCHW, OIHW, f32 HIGHEST)."""
    L = w3_oihw.shape[0]
    for l in range(L):
        h = jax.nn.relu(x)
        h = lax.conv_general_dilated(
            h, w3_oihw[l], (1, 1), ((1, 1), (1, 1)),
            dimension_numbers=("NCHW", "OIHW", "NCHW"),
            precision=lax.Precision.HIGHEST)
        h = jax.nn.relu(h)
        h = lax.conv_general_dilated(
            h, w1_oihw[l], (1, 1), "VALID",
            dimension_numbers=("NCHW", "OIHW", "NCHW"),
            precision=lax.Precision.HIGHEST)
        x = x + h
    return jax.nn.relu(gamma.reshape(1, -1, 1, 1) * x)


if __name__ == "__main__":
    N, C, H, W = 4, 8, 16, 16          # in_channels=8 -> reduced_channels=2; W*C=128
    L = 2                              # num_residual_layers=2
    Cr = C // 4

    key = jax.random.PRNGKey(0)
    kx, kg, *kws = jax.random.split(key, 2 + 2 * L)

    x = jax.random.normal(kx, (N, C, H, W), jnp.float32)
    w3_oihw = jnp.stack([0.1 * jax.random.normal(kws[2 * l], (Cr, C, 3, 3), jnp.float32)
                         for l in range(L)])                    # (L, Cr, C, 3, 3)
    w1_oihw = jnp.stack([0.1 * jax.random.normal(kws[2 * l + 1], (C, Cr, 1, 1), jnp.float32)
                         for l in range(L)])                    # (L, C, Cr, 1, 1)

    b3, b1 = pack_weights(w3_oihw, w1_oihw, W)

    # Test with the module's default init (gamma = 1e-6 * ones) AND an O(1) gamma
    # so the numerical comparison is meaningful.  Tolerances account for the
    # deliberate bf16 matmul operands (f32 accumulation, f32 residual path).
    gammas = {
        "default_1e-6": 1e-6 * jnp.ones((C,), jnp.float32),
        "order_1": jax.random.normal(kg, (C,), jnp.float32),
    }

    for name, gamma in gammas.items():
        out = jax.block_until_ready(residual_stack_forward(x, b3, b1, gamma))
        ref = ref_forward(x, w3_oihw, w1_oihw, gamma)
        assert out.shape == ref.shape == (N, C, H, W)
        err = float(jnp.max(jnp.abs(out - ref)))
        assert jnp.allclose(out, ref, rtol=1e-2, atol=5e-3), \
            f"gamma={name}: max abs err = {err}"

    print("KERNEL_OK")
</pallas_src>

<mosaic_0001>
module attributes {stable_mosaic.version = 11 : i64} {
  func.func @residual_stack_kernel(%arg0: i32, %arg1: memref<2x16x128xf32, #tpu.memory_space<vmem>>, %arg2: memref<2x384x32xbf16, #tpu.memory_space<vmem>>, %arg3: memref<2x32x128xbf16, #tpu.memory_space<vmem>>, %arg4: memref<1x128xf32, #tpu.memory_space<vmem>>, %arg5: memref<2x16x128xf32, #tpu.memory_space<vmem>>) attributes {dimension_semantics = [#tpu.dimension_semantics<parallel>], iteration_bounds = array<i64: 2>, scalar_prefetch = 0 : i64, scratch_operands = 0 : i64, tpu.core_type = #tpu.core_type<tc>, window_params = [{transform_indices = @transform_0, window_bounds = array<i64: 2, 16, 128>}, {pipeline_mode = #tpu.pipeline_mode<synchronous>, transform_indices = @transform_1, window_bounds = array<i64: 2, 384, 32>}, {pipeline_mode = #tpu.pipeline_mode<synchronous>, transform_indices = @transform_2, window_bounds = array<i64: 2, 32, 128>}, {pipeline_mode = #tpu.pipeline_mode<synchronous>, transform_indices = @transform_3, window_bounds = array<i64: 1, 128>}, {transform_indices = @transform_4, window_bounds = array<i64: 2, 16, 128>}]} {
    %cst = arith.constant 0.000000e+00 : f32
    %0 = vector.broadcast %cst : f32 to vector<2x1x128xf32>
    %c0 = arith.constant 0 : index
    %c0_0 = arith.constant 0 : index
    %c0_1 = arith.constant 0 : index
    %1 = vector.load %arg1[%c0, %c0_0, %c0_1] : memref<2x16x128xf32, #tpu.memory_space<vmem>>, vector<2x16x128xf32>
    %c0_i32 = arith.constant 0 : i32
    %cst_2 = arith.constant 0.000000e+00 : f32
    %2 = vector.broadcast %cst_2 : f32 to vector<2x16x128xf32>
    %3 = arith.maximumf %1, %2 : vector<2x16x128xf32>
    %4 = vector.extract_strided_slice %3 {offsets = [0, 0, 0], sizes = [2, 15, 128], strides = [1, 1, 1]} : vector<2x16x128xf32> to vector<2x15x128xf32>
    %5 = tpu.concatenate %0, %4 in 1 : vector<2x1x128xf32>, vector<2x15x128xf32> -> vector<2x16x128xf32>
    %6 = vector.extract_strided_slice %3 {offsets = [0, 1, 0], sizes = [2, 15, 128], strides = [1, 1, 1]} : vector<2x16x128xf32> to vector<2x15x128xf32>
    %7 = tpu.concatenate %6, %0 in 1 : vector<2x15x128xf32>, vector<2x1x128xf32> -> vector<2x16x128xf32>
    %8 = tpu.concatenate %5, %3, %7 in 2 : vector<2x16x128xf32>, vector<2x16x128xf32>, vector<2x16x128xf32> -> vector<2x16x384xf32>
    %9 = vector.shape_cast %8 : vector<2x16x384xf32> to vector<32x384xf32>
    %10 = arith.truncf %9 : vector<32x384xf32> to vector<32x384xbf16>
    %11 = arith.index_cast %c0_i32 : i32 to index
    %c0_3 = arith.constant 0 : index
    %c0_4 = arith.constant 0 : index
    %12 = vector.load %arg2[%11, %c0_3, %c0_4] : memref<2x384x32xbf16, #tpu.memory_space<vmem>>, vector<1x384x32xbf16>
    %13 = vector.shape_cast %12 : vector<1x384x32xbf16> to vector<384x32xbf16>
    %cst_5 = arith.constant dense<0.000000e+00> : vector<32x32xf32>
    %14 = tpu.matmul %10, %13, %cst_5 {dimension_numbers = #tpu.dot_dimension_numbers<[1], [0], [0], [1], [0, 0, 1, 1], [], []>} : vector<32x384xbf16>, vector<384x32xbf16>, vector<32x32xf32> -> vector<32x32xf32>
    %cst_6 = arith.constant 0.000000e+00 : f32
    %15 = vector.broadcast %cst_6 : f32 to vector<32x32xf32>
    %16 = arith.maximumf %14, %15 : vector<32x32xf32>
    %17 = arith.truncf %16 : vector<32x32xf32> to vector<32x32xbf16>
    %18 = arith.index_cast %c0_i32 : i32 to index
    %c0_7 = arith.constant 0 : index
    %c0_8 = arith.constant 0 : index
    %19 = vector.load %arg3[%18, %c0_7, %c0_8] : memref<2x32x128xbf16, #tpu.memory_space<vmem>>, vector<1x32x128xbf16>
    %20 = vector.shape_cast %19 : vector<1x32x128xbf16> to vector<32x128xbf16>
    %cst_9 = arith.constant dense<0.000000e+00> : vector<32x128xf32>
    %21 = tpu.matmul %17, %20, %cst_9 {dimension_numbers = #tpu.dot_dimension_numbers<[1], [0], [0], [1], [0, 0, 1, 1], [], []>} : vector<32x32xbf16>, vector<32x128xbf16>, vector<32x128xf32> -> vector<32x128xf32>
    %22 = vector.shape_cast %21 : vector<32x128xf32> to vector<2x16x128xf32>
    %23 = arith.addf %1, %22 : vector<2x16x128xf32>
    %c1_i32 = arith.constant 1 : i32
    %cst_10 = arith.constant 0.000000e+00 : f32
    %24 = vector.broadcast %cst_10 : f32 to vector<2x16x128xf32>
    %25 = arith.maximumf %23, %24 : vector<2x16x128xf32>
    %26 = vector.extract_strided_slice %25 {offsets = [0, 0, 0], sizes = [2, 15, 128], strides = [1, 1, 1]} : vector<2x16x128xf32> to vector<2x15x128xf32>
    %27 = tpu.concatenate %0, %26 in 1 : vector<2x1x128xf32>, vector<2x15x128xf32> -> vector<2x16x128xf32>
    %28 = vector.extract_strided_slice %25 {offsets = [0, 1, 0], sizes = [2, 15, 128], strides = [1, 1, 1]} : vector<2x16x128xf32> to vector<2x15x128xf32>
    %29 = tpu.concatenate %28, %0 in 1 : vector<2x15x128xf32>, vector<2x1x128xf32> -> vector<2x16x128xf32>
    %30 = tpu.concatenate %27, %25, %29 in 2 : vector<2x16x128xf32>, vector<2x16x128xf32>, vector<2x16x128xf32> -> vector<2x16x384xf32>
    %31 = vector.shape_cast %30 : vector<2x16x384xf32> to vector<32x384xf32>
    %32 = arith.truncf %31 : vector<32x384xf32> to vector<32x384xbf16>
    %33 = arith.index_cast %c1_i32 : i32 to index
    %c0_11 = arith.constant 0 : index
    %c0_12 = arith.constant 0 : index
    %34 = vector.load %arg2[%33, %c0_11, %c0_12] : memref<2x384x32xbf16, #tpu.memory_space<vmem>>, vector<1x384x32xbf16>
    %35 = vector.shape_cast %34 : vector<1x384x32xbf16> to vector<384x32xbf16>
    %cst_13 = arith.constant dense<0.000000e+00> : vector<32x32xf32>
    %36 = tpu.matmul %32, %35, %cst_13 {dimension_numbers = #tpu.dot_dimension_numbers<[1], [0], [0], [1], [0, 0, 1, 1], [], []>} : vector<32x384xbf16>, vector<384x32xbf16>, vector<32x32xf32> -> vector<32x32xf32>
    %cst_14 = arith.constant 0.000000e+00 : f32
    %37 = vector.broadcast %cst_14 : f32 to vector<32x32xf32>
    %38 = arith.maximumf %36, %37 : vector<32x32xf32>
    %39 = arith.truncf %38 : vector<32x32xf32> to vector<32x32xbf16>
    %40 = arith.index_cast %c1_i32 : i32 to index
    %c0_15 = arith.constant 0 : index
    %c0_16 = arith.constant 0 : index
    %41 = vector.load %arg3[%40, %c0_15, %c0_16] : memref<2x32x128xbf16, #tpu.memory_space<vmem>>, vector<1x32x128xbf16>
    %42 = vector.shape_cast %41 : vector<1x32x128xbf16> to vector<32x128xbf16>
    %cst_17 = arith.constant dense<0.000000e+00> : vector<32x128xf32>
    %43 = tpu.matmul %39, %42, %cst_17 {dimension_numbers = #tpu.dot_dimension_numbers<[1], [0], [0], [1], [0, 0, 1, 1], [], []>} : vector<32x32xbf16>, vector<32x128xbf16>, vector<32x128xf32> -> vector<32x128xf32>
    %44 = vector.shape_cast %43 : vector<32x128xf32> to vector<2x16x128xf32>
    %45 = arith.addf %23, %44 : vector<2x16x128xf32>
    %c2_i32 = arith.constant 2 : i32
    %c0_18 = arith.constant 0 : index
    %c0_19 = arith.constant 0 : index
    %46 = vector.load %arg4[%c0_18, %c0_19] : memref<1x128xf32, #tpu.memory_space<vmem>>, vector<1x128xf32>
    %47 = vector.shape_cast %46 : vector<1x128xf32> to vector<1x1x128xf32>
    %48 = vector.broadcast %47 : vector<1x1x128xf32> to vector<2x16x128xf32>
    %49 = arith.mulf %45, %48 : vector<2x16x128xf32>
    %cst_20 = arith.constant 0.000000e+00 : f32
    %50 = vector.broadcast %cst_20 : f32 to vector<2x16x128xf32>
    %51 = arith.maximumf %49, %50 : vector<2x16x128xf32>
    %c0_21 = arith.constant 0 : index
    %c0_22 = arith.constant 0 : index
    %c0_23 = arith.constant 0 : index
    %52 = vector.load %arg5[%c0_21, %c0_22, %c0_23] : memref<2x16x128xf32, #tpu.memory_space<vmem>>, vector<2x16x128xf32>
    tpu.vector_store %arg5[%c0_21, %c0_22, %c0_23], %51 {strides = array<i32>} : memref<2x16x128xf32, #tpu.memory_space<vmem>>, vector<2x16x128xf32>,
    return
  }
  func.func @transform_0(%arg0: i32) -> (i32, i32, i32) {
    %c0_i32 = arith.constant 0 : i32
    %c0_i32_0 = arith.constant 0 : i32
    %c0_i32_1 = arith.constant 0 : i32
    return %arg0, %c0_i32, %c0_i32_0 : i32, i32, i32
  }
  func.func @transform_1(%arg0: i32) -> (i32, i32, i32) {
    %c0_i32 = arith.constant 0 : i32
    %c0_i32_0 = arith.constant 0 : i32
    %c0_i32_1 = arith.constant 0 : i32
    %c0_i32_2 = arith.constant 0 : i32
    return %c0_i32, %c0_i32_0, %c0_i32_1 : i32, i32, i32
  }
  func.func @transform_2(%arg0: i32) -> (i32, i32, i32) {
    %c0_i32 = arith.constant 0 : i32
    %c0_i32_0 = arith.constant 0 : i32
    %c0_i32_1 = arith.constant 0 : i32
    %c0_i32_2 = arith.constant 0 : i32
    return %c0_i32, %c0_i32_0, %c0_i32_1 : i32, i32, i32
  }
  func.func @transform_3(%arg0: i32) -> (i32, i32) {
    %c0_i32 = arith.constant 0 : i32
    %c0_i32_0 = arith.constant 0 : i32
    %c0_i32_1 = arith.constant 0 : i32
    return %c0_i32, %c0_i32_0 : i32, i32
  }
  func.func @transform_4(%arg0: i32) -> (i32, i32, i32) {
    %c0_i32 = arith.constant 0 : i32
    %c0_i32_0 = arith.constant 0 : i32
    %c0_i32_1 = arith.constant 0 : i32
    return %arg0, %c0_i32, %c0_i32_0 : i32, i32, i32
  }
}

</mosaic_0001>

<bundles_post_ra>
// kernel: residual_stack_forward.1
= control target key start
LH: loop header
LB: loop body
LE: loop exit
PB: predicated region body
PF: predicated region fallthrough
CT: control target
= control target key end

     0   :  { %s1498_s15 = smov 0   ;;  %s1751_s0 = inlined_call_operand.vmem [shape: f32[4,16,128], index: 0, kind: input, shape index: {}]   ;;  %s1752_s1 = inlined_call_operand.vmem [shape: bf16[2,384,32], index: 1, kind: input, shape index: {}]   ;;  %s1753_s2 = inlined_call_operand.vmem [shape: bf16[2,32,128], index: 2, kind: input, shape index: {}]   ;;  %s1754_s3 = inlined_call_operand.vmem [shape: f32[1,128], index: 3, kind: input, shape index: {}]   ;;  %s1755_s4 = inlined_call_operand.vmem [shape: f32[4,16,128], index: 4, kind: output, shape index: {}]  }
   0x1 LB: > { %s1111_s16 = sadd.s32 4294967295, %s1470_s15   ;;  %p1115_p0 = scmp.ge.s32.totalorder %s1470_s15, 1  ;;  %s1470_s15 = sphi %s1498_s15, %s14_s15  }
   0x2   : > { %p164_p1 = scmp.lt.s32.totalorder %s1470_s15, 3 }
   0x4   : > { %p165_p2 = pnand %p1115_p0, %p164_p1 }
   0x5   : > { %v1412_v0 = vld [vmem:[%s1752_s1 + $0x40] sm:$0xff] (!%p165_p2)   ;;  %v1415_v3 = vld [vmem:[%s1752_s1 + $0x48] sm:$0xff] (!%p165_p2)   ;;  %v1418_v6 = vld [vmem:[%s1752_s1 + $0x50] sm:$0xff] (!%p165_p2)   ;;  %s1116_s7 = sshll.u32 (!%p165_p2), %s1111_s16, 1  ;;  %vm219_vm0 = vcmask (!%p165_p2), 1040384   ;;  %vm232_vm1 = vcmask (!%p165_p2), 1046528  }
   0x6   : > { %168 = sbr.rel (%p165_p2) target bundleno = 946 (0x3b2), region = 36  ;;  %v1413_v1 = vld [vmem:[%s1752_s1] sm:$0xff] (!%p165_p2)   ;;  %1263 = vmatprep.subr.bf16.mxu0 (!%p165_p2), %v1412_v0  ;;  %v1416_v4 = vld [vmem:[%s1752_s1 + $0x8] sm:$0xff] (!%p165_p2)   ;;  %v1419_v7 = vld [vmem:[%s1752_s1 + $0x10] sm:$0xff] (!%p165_p2)   ;;  %p193_p3 = scmp.lt.s32.totalorder (!%p165_p2), %s1116_s7, 3  ;;  %vm1472_vm3 = vmmov (!%p165_p2), 1  }
   0x7   : > { %v1414_v2 = vld [vmem:[%s1752_s1 + $0x80] sm:$0xff] (!%p165_p2)   ;;  %1264 = vmatpush3.bf16.msra.mxu0 (!%p165_p2), %v1413_v1  ;;  %v1417_v5 = vld [vmem:[%s1752_s1 + $0x88] sm:$0xff] (!%p165_p2)   ;;  %v1420_v8 = vld [vmem:[%s1752_s1 + $0x90] sm:$0xff] (!%p165_p2)   ;;  %vm563_vm6 = vcmask (!%p165_p2), 261120  }
   0x8   : > { %1347 = vmatprep.subr.bf16.mxu1 (!%p165_p2), %v1414_v2  ;;  %1265 = vmatprep.subr.bf16.mxu0 (!%p165_p2), %v1415_v3  ;;  %v1421_v9 = vld [vmem:[%s1752_s1 + $0x58] sm:$0xff] (!%p165_p2)   ;;  %v1424_v12 = vld [vmem:[%s1752_s1 + $0x60] sm:$0xff] (!%p165_p2)   ;;  %v1427_v15 = vld [vmem:[%s1752_s1 + $0x68] sm:$0xff] (!%p165_p2)  }
   0x9   : > { %1348 = vmatpush3.bf16.msra.mxu1 (!%p165_p2), %v1414_v2  ;;  %v1422_v10 = vld [vmem:[%s1752_s1 + $0x18] sm:$0xff] (!%p165_p2)   ;;  %v1426_v13 = vld [vmem:[%s1752_s1 + $0xa0] sm:$0xff] (!%p165_p2)   ;;  %v1429_v16 = vld [vmem:[%s1752_s1 + $0xa8] sm:$0xff] (!%p165_p2)  }
   0xa   : > { %1349 = vmatprep.subr.bf16.mxu1 (!%p165_p2), %v1417_v5  ;;  %v1423_v11 = vld [vmem:[%s1752_s1 + $0x98] sm:$0xff] (!%p165_p2)   ;;  %v1425_v14 = vld [vmem:[%s1752_s1 + $0x20] sm:$0xff] (!%p165_p2)   ;;  %v1428_v17 = vld [vmem:[%s1752_s1 + $0x28] sm:$0xff] (!%p165_p2)  }
   0xb   : > { %1266 = vmatpush3.bf16.msra.mxu0 (!%p165_p2), %v1416_v4  ;;  %v1430_v18 = vld [vmem:[%s1752_s1 + $0x70] sm:$0xff] (!%p165_p2)   ;;  %v1433_v21 = vld [vmem:[%s1752_s1 + $0x78] sm:$0xff] (!%p165_p2)   ;;  %vm1146_vm2 = vmneg (!%p165_p2), %vm219_vm0 }
   0xc   : > { %1267 = vmatprep.subr.bf16.mxu0 (!%p165_p2), %v1418_v6  ;;  %v1431_v19 = vld [vmem:[%s1752_s1 + $0x30] sm:$0xff] (!%p165_p2)   ;;  %v1435_v29 = vld [vmem:[%s1752_s1 + $0xb8] sm:$0xff] (!%p165_p2)   ;;  %vm1599_vm4 = vmpackc.low (!%p165_p2), %vm1472_vm3, %vm1146_vm2 }
   0xd   : > { %1350 = vmatpush3.bf16.msra.mxu1 %v1417_v5  ;;  %s1761_s7 = smov (!%p193_p3, %s1116_s7), 3  ;;  %v1432_v20 = vld [vmem:[%s1752_s1 + $0xb0] sm:$0xff]   ;;  %v1434_v31 = vld [vmem:[%s1752_s1 + $0x38] sm:$0xff]   ;;  %vm1605_vm5 = vmpackc.low %vm232_vm1, %vm1472_vm3 }
   0xe   : > { %1351 = vmatprep.subr.bf16.mxu1 %v1420_v8  ;;  %s1261_s27 = sshll.u32 %s1761_s7, 4  ;;  %v1436_v52 = vld [vmem:[%s1753_s2] sm:$0xff]   ;;  %v1437_v53 = vld [vmem:[%s1753_s2 + $0x8] sm:$0xff]   ;;  %v1444_v59 = vld [vmem:[%s1752_s1 + $0x110] sm:$0xff]  }
   0xf   : > { %1268 = vmatpush3.bf16.msra.mxu0 %v1419_v7  ;;  %s197_s11 = scalar_lea.vmem %s1751_s0, %s1261_s27  ;;  %v1438_v54 = vld [vmem:[%s1752_s1 + $0x100] sm:$0xff]   ;;  %v1441_v57 = vld [vmem:[%s1752_s1 + $0x108] sm:$0xff]   ;;  %v1445_v60 = vld [vmem:[%s1752_s1 + $0xd0] sm:$0xff]  }
  0x10   : > { %1269 = vmatprep.subr.bf16.mxu0 %v1421_v9  ;;  %v1580_v22 = vld [vmem:[%s197_s11] sm:$0xff]  ;;  %v1582_v23 = vld [vmem:[%s197_s11 + $0x8] sm:$0xff]  ;;  %v1584_v24 = vld [vmem:[%s197_s11 + $0x10] sm:$0xff] }
  0x11   : > { %1352 = vmatpush3.bf16.msra.mxu1 %v1420_v8  ;;  %v1586_v25 = vld [vmem:[%s197_s11 + $0x18] sm:$0xff]  ;;  %v211_v26 = vmax.f32 %v1580_v22, 0.0  ;;  %v212_v27 = vmax.f32 %v1582_v23, 0.0  ;;  %v213_v28 = vmax.f32 %v1584_v24, 0.0  ;;  %v1439_v55 = vld [vmem:[%s1752_s1 + $0xc0] sm:$0xff]   ;;  %v1442_v58 = vld [vmem:[%s1752_s1 + $0xc8] sm:$0xff]   ;;  %s204_s11 = scalar_lea.vmem %s1755_s4, %s1261_s27 }
  0x12   : > { %1353 = vmatprep.subr.bf16.mxu1 %v1423_v11  ;;  %v214_v30 = vmax.f32 %v1586_v25, 0.0  ;;  %v1440_v56 = vld [vmem:[%s1752_s1 + $0x140] sm:$0xff]   ;;  %v1447_v61 = vld [vmem:[%s1752_s1 + $0x118] sm:$0xff]  }
  0x13   : > { %1270 = vmatpush3.bf16.msra.mxu0 %v1422_v10  ;;  %v220_v32 = vrot.slane %v211_v26, 7  ;;  %v221_v33 = vrot.slane %v212_v27, 7  ;;  %v246_v34 = vpack.c.bf16 %v212_v27, %v211_v26  ;;  %v233_v35 = vrot.slane %v211_v26, 1  ;;  %v1448_v62 = vld [vmem:[%s1752_s1 + $0xd8] sm:$0xff]   ;;  %v1450_v63 = vld [vmem:[%s1752_s1 + $0x120] sm:$0xff]  }
  0x14   : > { %1271 = vmatprep.subr.bf16.mxu0 %v1424_v12  ;;  %v234_v37 = vrot.slane %v212_v27, 1  ;;  %v236_v38 = vrot.slane %v213_v28, 1  ;;  %v237_v39 = vrot.slane %v214_v30, 1  ;;  %v223_v42 = vrot.slane %v213_v28, 7  ;;  %v1451_v0 = vld [vmem:[%s1752_s1 + $0xe0] sm:$0xff]  }
  0x15   : > { %1354 = vmatpush3.bf16.msra.mxu1 %v1423_v11  ;;  %475 = vmatprep.mubr.bf16.mxu0 %v246_v34  ;;  %v222_v40 = vsel %vm219_vm0, %v220_v32, %v221_v33  ;;  %v224_v43 = vrot.slane %v214_v30, 7  ;;  %v249_v48 = vpack.c.bf16 %v214_v30, %v213_v28  ;;  %v1449_v33 = vld [vmem:[%s1752_s1 + $0x158] sm:$0xff]   ;;  %v1452_v34 = vld [vmem:[%s1752_s1 + $0x160] sm:$0xff]  }
  0x16   : > { %1355 = vmatprep.subr.bf16.mxu1 %v1426_v13  ;;  %v1148_v44 = vpack.c.bf16 %v222_v40, %v220_v32  ;;  %v235_v45 = vsel %vm232_vm1, %v233_v35, %v234_v37  ;;  %v238_v46 = vsel %vm232_vm1, %v236_v38, %v237_v39  ;;  %v1446_v32 = vld [vmem:[%s1752_s1 + $0x150] sm:$0xff]   ;;  %v1453_v35 = vld [vmem:[%s1752_s1 + $0x128] sm:$0xff]  }
  0x17   : > { %1272 = vmatpush3.bf16.msra.mxu0 %v1425_v14  ;;  %v1155_v47 = vpack.c.bf16 %v234_v37, %v235_v45  ;;  %v1158_v49 = vpack.c.bf16 %v237_v39, %v238_v46  ;;  %v225_v50 = vsel %vm219_vm0, %v223_v42, %v224_v43  ;;  %v1454_v37 = vld [vmem:[%s1752_s1 + $0xe8] sm:$0xff]   ;;  %v1456_v39 = vld [vmem:[%s1752_s1 + $0x130] sm:$0xff]   ;;  %v1459_v43 = vld [vmem:[%s1752_s1 + $0x138] sm:$0xff]  }
  0x18   : > { %1273 = vmatprep.subr.bf16.mxu0 %v1427_v15  ;;  %v1152_v51 = vpack.c.bf16 %v225_v50, %v223_v42  ;;  %v1455_v38 = vld [vmem:[%s1752_s1 + $0x168] sm:$0xff]   ;;  %v1457_v40 = vld [vmem:[%s1752_s1 + $0xf0] sm:$0xff]   ;;  %v1461_v45 = vld [vmem:[%s1752_s1 + $0x178] sm:$0xff]  }
  0x19   : > { %1356 = vmatpush3.bf16.msra.mxu1 %v1426_v13  ;;  %1363 = vmatprep.mubr.msk.bf16.mxu1 %vm1605_vm5, %v1155_v47  ;;  %v1458_v42 = vld [vmem:[%s1752_s1 + $0x170] sm:$0xff]  }
  0x1a   : > { %1357 = vmatprep.subr.bf16.mxu1 %v1429_v16 }
  0x1b   : > { %1274 = vmatpush3.bf16.msra.mxu0 %v1428_v17 }
  0x1c   : > { %1275 = vmatprep.subr.bf16.mxu0 %v1430_v18 }
  0x1d   : > { %1358 = vmatpush3.bf16.msra.mxu1 %v1429_v16 }
  0x1e   : > { %1359 = vmatprep.subr.bf16.mxu1 %v1432_v20 }
  0x1f   : > { %1276 = vmatpush3.bf16.msra.mxu0 %v1431_v19 }
  0x20   : > { %1277 = vmatprep.subr.bf16.mxu0 %v1433_v21 }
  0x21   : > { %1360 = vmatpush3.bf16.msra.mxu1 %v1432_v20 }
  0x22   : > { %1361 = vmatprep.subr.bf16.mxu1 %v1435_v29 }
  0x23   : > { %1278 = vmatpush3.bf16.msra.mxu0 %v1434_v31  ;;  %v1443_v31 = vld [vmem:[%s1752_s1 + $0x148] sm:$0xff]  }
  0x24   : > { %1305 = vmatprep.subr.bf16.mxu0 %v1438_v54 }
  0x25   : > { %1362 = vmatpush3.bf16.msra.mxu1 %v1435_v29 }
  0x26   : > { %1149 = vmatmul.mubr.msk.bf16.vlgmr.msra.gmra.mrb[0].mxu0 %vm1599_vm4, %v1148_v44  ;;  %1367 = vmatprep.subr.bf16.mxu1 %v1436_v52  ;;  %v1460_v44 = vld [vmem:[%s1752_s1 + $0xf8] sm:$0xff]  }
  0x27   : > { %483 = vmatprep.mubr.bf16.mxu0 %v249_v48  ;;  %1306 = vmatpush3.bf16.msra.mxu0 %v1439_v55 }
  0x28   : > { %1364 = vmatmul.mubr.msk.bf16.vlgmr.msra.gmra.mrb[0].mxu1 %vm1605_vm5, %v1158_v49  ;;  %1307 = vmatprep.subr.bf16.mxu0 %v1441_v57 }
  0x29   : > { %1368 = vmatpush3.bf16.msra.mxu1 %v1436_v52 }
  0x2a   : > { %1369 = vmatprep.subr.bf16.mxu1 %v1437_v53 }
  0x2b   : > { %1308 = vmatpush3.bf16.msra.mxu0 %v1442_v58 }
  0x2c   : > { %1309 = vmatprep.subr.bf16.mxu0 %v1444_v59 }
  0x2d   : > { %1370 = vmatpush3.bf16.msra.mxu1 %v1437_v53 }
  0x2e   : > { %1153 = vmatmul.mubr.msk.bf16.gmra.mrb[4].mxu0 %vm1599_vm4, %v1152_v51  ;;  %1375 = vmatprep.subr.bf16.mxu1 %v1440_v56 }
  0x2f   : > { %1310 = vmatpush3.bf16.msra.mxu0 %v1445_v60 }
  0x30   : > { %1311 = vmatprep.subr.bf16.mxu0 %v1447_v61 }
  0x33   : > { %1312 = vmatpush3.bf16.msra.mxu0 %v1448_v62 }
  0x34   : > { %1313 = vmatprep.subr.bf16.mxu0 %v1450_v63 }
  0x37   : > { %1314 = vmatpush3.bf16.msra.mxu0 %v1451_v0 }
  0x38   : > { %1315 = vmatprep.subr.bf16.mxu0 %v1453_v35 }
  0x3b   : > { %1316 = vmatpush3.bf16.msra.mxu0 %v1454_v37 }
  0x3c   : > { %1317 = vmatprep.subr.bf16.mxu0 %v1456_v39 }
  0x3f   : > { %1318 = vmatpush3.bf16.msra.mxu0 %v1457_v40  ;;  %v1258_v40 = vld [vmem:[%s1754_s3] ss:$0 sm:$0xff] }
  0x40   : > { %1319 = vmatprep.subr.bf16.mxu0 %v1459_v43 }
  0x43   : > { %1320 = vmatpush3.bf16.msra.mxu0 %v1460_v44 }
  0xf9   : > { %v1279_v1 = vpop.f32.mrb[0].mxu0 }
  0xfa   : > { %v1280_v2 = vpop.f32.mrb[1].mxu0 }
  0xfb   : > { %v1281_v3 = vadd.f32 %v1280_v2, %v1279_v1  ;;  %v1282_v4 = vpop.f32.mrb[2].mxu0  ;;  %v1365_v5 = vpop.f32.mrb[0].mxu1 }
  0xfc   : > { %v1283_v6 = vpop.f32.mrb[3].mxu0  ;;  %v526_v7 = vpop.f32.mrb[1].mxu1 }
  0xfd   : > { %v1284_v8 = vadd.f32 %v1283_v6, %v1282_v4  ;;  %v527_v9 = vadd.f32 %v1281_v3, %v526_v7  ;;  %v1366_v10 = vpop.f32.mrb[2].mxu1 }
  0xfe   : > { %v529_v11 = vpop.f32.mrb[3].mxu1 }
  0xff   : > { %v530_v12 = vadd.f32 %v1284_v8, %v529_v11  ;;  %v541_v13 = vmax.f32 %v527_v9, 0.0  ;;  %v1462_v8 = vld [vmem:[%s1753_s2 + $0x10] sm:$0xff]   ;;  %v1463_v9 = vld [vmem:[%s1753_s2 + $0x18] sm:$0xff]  }
 0x100   : > { %1395 = vmatprep.subr.bf16.mxu0 %v1462_v8 }
 0x101   : > { %v542_v14 = vmax.f32 %v530_v12, 0.0  ;;  %v1285_v15 = vpop.f32.mrb[4].mxu0 }
 0x102   : > { %v1286_v16 = vpop.f32.mrb[5].mxu0 }
 0x103   : > { %v545_v17 = vpack.c.bf16 %v542_v14, %v541_v13  ;;  %v1287_v18 = vadd.f32 %v1286_v16, %v1285_v15  ;;  %v1288_v19 = vpop.f32.mrb[6].mxu0 }
 0x104   : > { %v1289_v20 = vpop.f32.mrb[7].mxu0 }
 0x105   : > { %v535_v21 = vadd.f32 %v1365_v5, %v1287_v18  ;;  %v1290_v26 = vadd.f32 %v1289_v20, %v1288_v19  ;;  %1371 = vmatprep.mubr.msk.bf16.mxu1 %vm563_vm6, %v545_v17 }
 0x107   : > { %v538_v27 = vadd.f32 %v1366_v10, %v1290_v26  ;;  %v543_v28 = vmax.f32 %v535_v21, 0.0 }
 0x109   : > { %v544_v29 = vmax.f32 %v538_v27, 0.0 }
 0x10b   : > { %v546_v30 = vpack.c.bf16 %v544_v29, %v543_v28 }
 0x10d   : > { %1372 = vmatmul.mubr.msk.bf16.vlgmr.msra.gmra.mrb[4].mxu1 %vm563_vm6, %v546_v30 }
 0x10e   : > { %1376 = vmatpush3.bf16.msra.mxu1 %v1440_v56 }
 0x10f   : > { %1377 = vmatprep.subr.bf16.mxu1 %v1443_v31 }
 0x112   : > { %1378 = vmatpush3.bf16.msra.mxu1 %v1443_v31 }
 0x113   : > { %1379 = vmatprep.subr.bf16.mxu1 %v1446_v32 }
 0x116   : > { %1380 = vmatpush3.bf16.msra.mxu1 %v1446_v32 }
 0x117   : > { %1381 = vmatprep.subr.bf16.mxu1 %v1449_v33 }
 0x11a   : > { %1382 = vmatpush3.bf16.msra.mxu1 %v1449_v33 }
 0x11b   : > { %1383 = vmatprep.subr.bf16.mxu1 %v1452_v34 }
 0x11e   : > { %1384 = vmatpush3.bf16.msra.mxu1 %v1452_v34 }
 0x11f   : > { %1385 = vmatprep.subr.bf16.mxu1 %v1455_v38 }
 0x122   : > { %1386 = vmatpush3.bf16.msra.mxu1 %v1455_v38 }
 0x123   : > { %1387 = vmatprep.subr.bf16.mxu1 %v1458_v42 }
 0x126   : > { %1388 = vmatpush3.bf16.msra.mxu1 %v1458_v42 }
 0x127   : > { %1389 = vmatprep.subr.bf16.mxu1 %v1461_v45 }
 0x12a   : > { %1390 = vmatpush3.bf16.msra.mxu1 %v1461_v45 }
 0x1e0   : > { %v1373_v46 = vpop.f32.mrb[4].mxu1 }
 0x1e1   : > { %v1701_v47 = vadd.f32 %v1373_v46, %v1584_v24  ;;  %v604_v48 = vpop.f32.mrb[5].mxu1 }
 0x1e2   : > { %v1704_v49 = vadd.f32 %v604_v48, %v1580_v22  ;;  %v1374_v50 = vpop.f32.mrb[6].mxu1 }
 0x1e3   : > { %v625_v51 = vmax.f32 %v1701_v47, 0.0  ;;  %v1708_v52 = vadd.f32 %v1374_v50, %v1586_v25  ;;  %v607_v53 = vpop.f32.mrb[7].mxu1 }
 0x1e4   : > { %v623_v54 = vmax.f32 %v1704_v49, 0.0  ;;  %v1712_v55 = vadd.f32 %v607_v53, %v1582_v23 }
 0x1e5   : > { %v626_v56 = vmax.f32 %v1708_v52, 0.0  ;;  %v646_v57 = vrot.slane %v625_v51, 1  ;;  %v634_v5 = vrot.slane %v625_v51, 7 }
 0x1e6   : > { %v624_v24 = vmax.f32 %v1712_v55, 0.0  ;;  %v631_v58 = vrot.slane %v623_v54, 7  ;;  %v643_v59 = vrot.slane %v623_v54, 1 }
 0x1e7   : > { %v647_v22 = vrot.slane %v626_v56, 1  ;;  %v635_v2 = vrot.slane %v626_v56, 7  ;;  %v659_v4 = vpack.c.bf16 %v626_v56, %v625_v51 }
 0x1e8   : > { %v632_v60 = vrot.slane %v624_v24, 7  ;;  %v644_v61 = vrot.slane %v624_v24, 1  ;;  %v656_v62 = vpack.c.bf16 %v624_v24, %v623_v54 }
 0x1e9   : > { %v648_v25 = vsel %vm232_vm1, %v646_v57, %v647_v22  ;;  %v636_v6 = vsel %vm219_vm0, %v634_v5, %v635_v2 }
 0x1ea   : > { %v633_v63 = vsel %vm219_vm0, %v631_v58, %v632_v60  ;;  %886 = vmatprep.mubr.bf16.mxu0 %v656_v62  ;;  %v645_v0 = vsel %vm232_vm1, %v643_v59, %v644_v61  ;;  %v1248_v3 = vpack.c.bf16 %v647_v22, %v648_v25  ;;  %v1242_v7 = vpack.c.bf16 %v636_v6, %v634_v5 }
 0x1eb   : > { %v1238_v23 = vpack.c.bf16 %v633_v63, %v631_v58  ;;  %v1245_v1 = vpack.c.bf16 %v644_v61, %v645_v0 }
 0x1ed   : > { %1239 = vmatmul.mubr.msk.bf16.vlgmr.msra.gmra.mrb[8].mxu0 %vm1599_vm4, %v1238_v23  ;;  %1391 = vmatprep.mubr.msk.bf16.mxu1 %vm1605_vm5, %v1245_v1 }
 0x1ee   : > { %894 = vmatprep.mubr.bf16.mxu0 %v659_v4  ;;  %1392 = vmatmul.mubr.msk.bf16.vlgmr.msra.gmra.mrb[8].mxu1 %vm1605_vm5, %v1248_v3 }
 0x1ef   : > { %1396 = vmatpush3.bf16.msra.mxu0 %v1462_v8 }
 0x1f0   : > { %1397 = vmatprep.subr.bf16.mxu0 %v1463_v9 }
 0x1f3   : > { %1398 = vmatpush3.bf16.msra.mxu0 %v1463_v9 }
 0x1f5   : > { %1243 = vmatmul.mubr.msk.bf16.gmra.mrb[12].mxu0 %vm1599_vm4, %v1242_v7 }
 0x2c0   : > { %v1321_v41 = vpop.f32.mrb[8].mxu0 }
 0x2c1   : > { %v1322_v10 = vpop.f32.mrb[9].mxu0  ;;  %v1393_v11 = vpop.f32.mrb[8].mxu1 }
 0x2c2   : > { %v1323_v12 = vadd.f32 %v1322_v10, %v1321_v41  ;;  %v1324_v13 = vpop.f32.mrb[10].mxu0  ;;  %v937_v14 = vpop.f32.mrb[9].mxu1 }
 0x2c3   : > { %v1325_v36 = vpop.f32.mrb[11].mxu0  ;;  %v1394_v15 = vpop.f32.mrb[10].mxu1 }
 0x2c4   : > { %v938_v16 = vadd.f32 %v1323_v12, %v937_v14  ;;  %v1326_v17 = vadd.f32 %v1325_v36, %v1324_v13  ;;  %v940_v18 = vpop.f32.mrb[11].mxu1 }
 0x2c6   : > { %v941_v19 = vadd.f32 %v1326_v17, %v940_v18  ;;  %v952_v20 = vmax.f32 %v938_v16, 0.0 }
 0x2c8   : > { %v953_v21 = vmax.f32 %v941_v19, 0.0  ;;  %v1327_v26 = vpop.f32.mrb[12].mxu0 }
 0x2c9   : > { %v1328_v27 = vpop.f32.mrb[13].mxu0 }
 0x2ca   : > { %v956_v28 = vpack.c.bf16 %v953_v21, %v952_v20  ;;  %v1329_v29 = vadd.f32 %v1328_v27, %v1327_v26  ;;  %v1330_v30 = vpop.f32.mrb[14].mxu0 }
 0x2cb   : > { %v1331_v31 = vpop.f32.mrb[15].mxu0 }
 0x2cc   : > { %v946_v32 = vadd.f32 %v1393_v11, %v1329_v29  ;;  %v1332_v33 = vadd.f32 %v1331_v31, %v1330_v30  ;;  %1399 = vmatprep.mubr.msk.bf16.mxu0 %vm563_vm6, %v956_v28 }
 0x2ce   : > { %v949_v34 = vadd.f32 %v1394_v15, %v1332_v33  ;;  %v954_v35 = vmax.f32 %v946_v32, 0.0 }
 0x2d0   : > { %v955_v37 = vmax.f32 %v949_v34, 0.0 }
 0x2d2   : > { %v957_v38 = vpack.c.bf16 %v955_v37, %v954_v35 }
 0x2d4   : > { %1400 = vmatmul.mubr.msk.bf16.vlgmr.msra.gmra.mrb[16].mxu0 %vm563_vm6, %v957_v38 }
 0x3a7   : > { %v1401_v39 = vpop.f32.mrb[16].mxu0 }
 0x3a8   : > { %v1032_v42 = vadd.f32 %v1401_v39, %v1701_v47  ;;  %v1015_v43 = vpop.f32.mrb[17].mxu0 }
 0x3a9   : > { %v1030_v44 = vadd.f32 %v1015_v43, %v1704_v49  ;;  %v1402_v45 = vpop.f32.mrb[18].mxu0 }
 0x3aa   : > { %v1043_v46 = vmul.f32 %v1258_v40, %v1032_v42  ;;  %v1033_v48 = vadd.f32 %v1402_v45, %v1708_v52  ;;  %v1018_v50 = vpop.f32.mrb[19].mxu0 }
 0x3ab   : > { %v1041_v51 = vmul.f32 %v1258_v40, %v1030_v44  ;;  %v1031_v53 = vadd.f32 %v1018_v50, %v1712_v55 }
 0x3ac   : > { %v1044_v54 = vmul.f32 %v1258_v40, %v1033_v48  ;;  %v1047_v47 = vmax.f32 %v1043_v46, 0.0 }
 0x3ad   : > { %v1045_v56 = vmax.f32 %v1041_v51, 0.0  ;;  %v1042_v24 = vmul.f32 %v1258_v40, %v1031_v53 }
 0x3ae   : > { %1051 = vst [vmem:[%s204_s11 + $0x10] sm:$0xff] %v1047_v47  ;;  %v1048_v49 = vmax.f32 %v1044_v54, 0.0 }
 0x3af   : > { %1049 = vst [vmem:[%s204_s11] sm:$0xff] %v1045_v56  ;;  %v1046_v57 = vmax.f32 %v1042_v24, 0.0 }
 0x3b0   : > { %1052 = vst [vmem:[%s204_s11 + $0x18] sm:$0xff] %v1048_v49 }
 0x3b1   : > { %1050 = vst [vmem:[%s204_s11 + $0x8] sm:$0xff] %v1046_v57 }
 0x3b2 PF: > { %s14_s15 = sadd.s32 1, %s1470_s15  }
 0x3b3   : > { %p11_p4 = scmp.ge.s32.totalorder %s14_s15, 4  }
 0x3b5   :  { %13 = sbr.rel (!%p11_p4) target bundleno = 1 (0x1), region = 68 }

</bundles_post_ra>
